<compile_context>
chip_gen: v7x
topology: tpu7x:2x2x1
jax: 0.10.0
libtpu: 0.0.40
codegen_flags: <defaults>
</compile_context>

<pallas_src>
import functools

import jax
import jax.numpy as jnp
from jax.experimental import pallas as pl
from jax.experimental.pallas import tpu as pltpu

LANE = 128   # lane width (last dim)
SUB = 8      # f32 sublanes (second-to-last dim)
_BF16_B, _F32_B = 2, 4

_WEIGHT_RESIDENT_BUDGET = 40 * 1024 * 1024   # resident bf16 weights must fit under this
_ACT_BUDGET = 16 * 1024 * 1024               # x/out/acc tiles kept under this


def _round_up(n, m):
    return ((n + m - 1) // m) * m


def _cdiv(a, b):
    return -(-a // b)


def _resident_spec(shape, index_map):
    """Single-buffered BlockSpec for blocks whose index never changes (resident weights).

    Pallas double-buffers every input by default; for grid-constant blocks that is pure
    VMEM waste, so request a single buffer.  Falls back to a plain BlockSpec if this jax
    version does not expose pipeline_mode / Buffered.
    """
    buffered = getattr(pl, "Buffered", None)
    if buffered is not None:
        try:
            return pl.BlockSpec(shape, index_map, pipeline_mode=buffered(1))
        except TypeError:
            pass
    return pl.BlockSpec(shape, index_map)


def _make_kernel(*, training, out_valid, num_k):
    """fc1 -> ReLU -> fc2 (-> one-hot(argmax) in eval) on one (TB, *) batch tile.

    MXU operands are bf16, accumulation and the whole epilogue are f32.  When num_k > 1
    the hidden dim is tiled: each step computes relu(x @ w1_k + b1_k) @ w2_k and
    accumulates into an f32 VMEM scratch, finalized on the last hidden tile.
    """

    def _finalize(y, out_ref):
        if training:
            out_ref[...] = y.astype(out_ref.dtype)
        else:
            # eval: one_hot(argmax(y[:, :out_valid])) with first-occurrence tie-break
            # (matches torch).  Padded logit columns are masked so they can never win.
            col = jax.lax.broadcasted_iota(jnp.int32, y.shape, dimension=1)
            if out_valid < y.shape[-1]:
                y = jnp.where(col < out_valid, y, -jnp.inf)
            amax = jnp.argmax(y, axis=-1, keepdims=True)
            out_ref[...] = jnp.where(col == amax, 1.0, 0.0).astype(out_ref.dtype)

    def _partial_out(x_ref, w1_ref, b1_ref, w2_ref):
        h = jnp.dot(x_ref[...], w1_ref[...], preferred_element_type=jnp.float32)
        h = jnp.maximum(h + b1_ref[...], 0.0)
        return jnp.dot(h.astype(jnp.bfloat16), w2_ref[...],
                       preferred_element_type=jnp.float32)

    if num_k == 1:
        def kernel(x_ref, w1_ref, b1_ref, w2_ref, b2_ref, out_ref):
            y = _partial_out(x_ref, w1_ref, b1_ref, w2_ref) + b2_ref[...]
            _finalize(y, out_ref)
    else:
        def kernel(x_ref, w1_ref, b1_ref, w2_ref, b2_ref, out_ref, acc_ref):
            k = pl.program_id(1)

            @pl.when(k == 0)
            def _():
                acc_ref[...] = jnp.zeros_like(acc_ref)

            acc_ref[...] += _partial_out(x_ref, w1_ref, b1_ref, w2_ref)

            @pl.when(k == num_k - 1)
            def _():
                _finalize(acc_ref[...] + b2_ref[...], out_ref)

    return kernel


def _pad2(a, rows, cols, dtype):
    a = a.astype(dtype)
    pr, pc = rows - a.shape[0], cols - a.shape[1]
    if pr or pc:
        a = jnp.pad(a, ((0, pr), (0, pc)))
    return a


@functools.partial(jax.jit, static_argnames=("training", "hidden_tile"))
def feedforward_nn(x, w1, b1, w2, b2, *, training=False, hidden_tile=None):
    """x: [B, input]; w1: [input, hidden]; b1: [hidden]; w2: [hidden, output]; b2: [output].
    Returns [B, output] float32 (raw logits when training, one-hot(argmax) in eval).

    Weights are in [in, out] layout (PyTorch's Linear.weight transposed)."""
    B, I = x.shape
    H = w1.shape[1]
    O = w2.shape[1]

    I_p = _round_up(I, LANE)
    O_p = _round_up(O, LANE)
    H_full = _round_up(H, LANE)

    # ---- hidden (K) tile: keep w1/w2 fully VMEM-resident when they fit (single K step);
    # otherwise tile the hidden dim over a second, "arbitrary" grid axis. ----
    if hidden_tile is not None:
        TH = max(LANE, min(_round_up(hidden_tile, LANE), H_full))
    elif (I_p + O_p) * H_full * _BF16_B <= _WEIGHT_RESIDENT_BUDGET:
        TH = H_full
    else:
        TH = (_WEIGHT_RESIDENT_BUDGET // (2 * _BF16_B * (I_p + O_p))) // LANE * LANE
        TH = max(LANE, min(TH, H_full))
    H_p = _round_up(H, TH)
    nk = H_p // TH
    weights_resident = nk == 1

    # ---- batch tile: large (amortizes ~0.35us/step pipeline overhead), multiple of 8
    # sublanes, capped at 512, and >=2 tiles whenever B allows so the "parallel" batch
    # axis can feed both v7x TensorCores (harmless on single-TC v5e/v6e). ----
    n_tiles_target = 2 if B >= 2 * SUB else 1
    TB = min(512, _round_up(_cdiv(B, n_tiles_target), SUB))
    while TB > SUB and (2 * TB * I_p * _BF16_B + 3 * TB * O_p * _F32_B) > _ACT_BUDGET:
        TB = max(SUB, _round_up(TB // 2, SUB))
    B_p = _round_up(B, TB)
    nb = B_p // TB

    # ---- explicit VMEM limit sized from the real footprint (+headroom); the scoped
    # defaults (16 MiB v5e / 32 MiB v6e,v7x) are far below what resident weights need. ----
    wbuf = 1 if weights_resident else 2
    footprint = (
        2 * TB * I_p * _BF16_B                     # x tiles (double-buffered)
        + wbuf * TH * (I_p + O_p) * _BF16_B        # w1 + w2 tiles
        + wbuf * SUB * (TH + O_p) * _F32_B         # b1 + b2 tiles (sublane-padded)
        + 2 * TB * O_p * _F32_B                    # out tiles (double-buffered)
        + (TB * O_p * _F32_B if nk > 1 else 0)     # f32 accumulator scratch
    )
    vmem_limit = min(max(int(footprint * 1.5) + (4 << 20), 16 << 20), 128 << 20)

    # ---- pad + cast in the wrapper (fused under jit; jnp.pad is skipped when already
    # aligned).  Zero padding is exact: padded input cols hit zero w1 rows, padded hidden
    # units have zero weights/bias (ReLU(0)=0) and zero w2 rows, padded output cols are
    # sliced off below.
    # TODO(synk): in a real deployment, pre-pad/cast the bf16 weights once at init
    # instead of on every call.
    bf16, f32 = jnp.bfloat16, jnp.float32
    x_p = _pad2(x, B_p, I_p, bf16)
    w1_p = _pad2(w1, I_p, H_p, bf16)
    w2_p = _pad2(w2, H_p, O_p, bf16)
    b1_p = _pad2(b1.reshape(1, -1), 1, H_p, f32)
    b2_p = _pad2(b2.reshape(1, -1), 1, O_p, f32)

    kernel = _make_kernel(training=training, out_valid=O, num_k=nk)
    wspec = _resident_spec if weights_resident else pl.BlockSpec

    cost = pl.CostEstimate(
        flops=2 * B_p * H_p * (I_p + O_p),
        transcendentals=0,
        bytes_accessed=(x_p.size * _BF16_B + w1_p.size * _BF16_B + w2_p.size * _BF16_B
                        + b1_p.size * _F32_B + b2_p.size * _F32_B + B_p * O_p * _F32_B),
    )

    out = pl.pallas_call(
        kernel,
        out_shape=jax.ShapeDtypeStruct((B_p, O_p), f32),
        grid=(nb, nk),                                        # batch tiles x hidden tiles
        in_specs=[
            pl.BlockSpec((TB, I_p), lambda i, k: (i, 0)),     # x: tiled over batch
            wspec((I_p, TH), lambda i, k: (0, k)),            # w1
            wspec((1, TH), lambda i, k: (0, k)),              # b1
            wspec((TH, O_p), lambda i, k: (k, 0)),            # w2
            _resident_spec((1, O_p), lambda i, k: (0, 0)),    # b2: always grid-constant
        ],
        out_specs=pl.BlockSpec((TB, O_p), lambda i, k: (i, 0)),
        scratch_shapes=([pltpu.VMEM((TB, O_p), f32)] if nk > 1 else []),
        compiler_params=pltpu.CompilerParams(
            dimension_semantics=("parallel", "arbitrary"),
            vmem_limit_bytes=vmem_limit,
        ),
        cost_estimate=cost,
    )(x_p, w1_p, b1_p, w2_p, b2_p)

    return out[:B, :O]


def _reference_logits(x, w1, b1, w2, b2):
    h = jnp.maximum(x.astype(jnp.float32) @ w1 + b1, 0.0)
    return h @ w2 + b2


def _check_eval_onehot(z, ref_logits, tol=1e-1):
    # z must be a valid row-wise one-hot and the selected class must be (near-)argmax of
    # the f32 reference logits (robust to bf16-MXU rounding in the presence of near-ties).
    assert z.shape == ref_logits.shape
    assert bool(jnp.all((z == 0.0) | (z == 1.0)))
    assert bool(jnp.all(jnp.sum(z, axis=-1) == 1.0))
    picked = jnp.sum(ref_logits * z, axis=-1)
    assert bool(jnp.all(picked >= jnp.max(ref_logits, axis=-1) - tol))


if __name__ == "__main__":
    # Small shapes consistent with the module: Linear(input, hidden), Linear(hidden, output).
    B, INPUT, HIDDEN, OUTPUT = 2, 16, 32, 8

    key = jax.random.PRNGKey(0)
    kx, k1, k2, k3, k4 = jax.random.split(key, 5)
    x = jax.random.normal(kx, (B, INPUT), dtype=jnp.float32)

    # Deterministic "Linear" params (PyTorch stores weight as [out, in]; we keep [in, out]).
    bound1 = 1.0 / (INPUT ** 0.5)
    w1 = jax.random.uniform(k1, (INPUT, HIDDEN), jnp.float32, -bound1, bound1)
    b1 = jax.random.uniform(k2, (HIDDEN,), jnp.float32, -bound1, bound1)
    bound2 = 1.0 / (HIDDEN ** 0.5)
    w2 = jax.random.uniform(k3, (HIDDEN, OUTPUT), jnp.float32, -bound2, bound2)
    b2 = jax.random.uniform(k4, (OUTPUT,), jnp.float32, -bound2, bound2)

    ref_y = _reference_logits(x, w1, b1, w2, b2)

    # training=True branch: raw logits (bf16 MXU operands, f32 accumulation -> loose tol).
    y_train = feedforward_nn(x, w1, b1, w2, b2, training=True)
    jax.block_until_ready(y_train)
    assert y_train.shape == ref_y.shape
    assert bool(jnp.allclose(y_train, ref_y, atol=3e-2, rtol=3e-2))

    # training=False branch: one-hot of argmax.
    z_eval = feedforward_nn(x, w1, b1, w2, b2, training=False)
    jax.block_until_ready(z_eval)
    _check_eval_onehot(z_eval, ref_y)

    # Larger batch + forced hidden-dim tiling: exercises the multi-tile batch grid
    # (nb > 1) and the K-accumulation path (nk > 1) cheaply.
    B2, HIDDEN2 = 20, 256
    key2 = jax.random.PRNGKey(1)
    kx2, k5, k6, k7, k8 = jax.random.split(key2, 5)
    x2 = jax.random.normal(kx2, (B2, INPUT), dtype=jnp.float32)
    w1b = jax.random.uniform(k5, (INPUT, HIDDEN2), jnp.float32, -bound1, bound1)
    b1b = jax.random.uniform(k6, (HIDDEN2,), jnp.float32, -bound1, bound1)
    bound2b = 1.0 / (HIDDEN2 ** 0.5)
    w2b = jax.random.uniform(k7, (HIDDEN2, OUTPUT), jnp.float32, -bound2b, bound2b)
    b2b = jax.random.uniform(k8, (OUTPUT,), jnp.float32, -bound2b, bound2b)

    ref_y2 = _reference_logits(x2, w1b, b1b, w2b, b2b)
    y2_train = feedforward_nn(x2, w1b, b1b, w2b, b2b, training=True, hidden_tile=128)
    jax.block_until_ready(y2_train)
    assert bool(jnp.allclose(y2_train, ref_y2, atol=8e-2, rtol=8e-2))

    z2_eval = feedforward_nn(x2, w1b, b1b, w2b, b2b, training=False, hidden_tile=128)
    jax.block_until_ready(z2_eval)
    _check_eval_onehot(z2_eval, ref_y2)

    print("KERNEL_OK")
</pallas_src>

<mosaic_0001>
module attributes {stable_mosaic.version = 11 : i64} {
  func.func @kernel(%arg0: i32, %arg1: i32, %arg2: memref<8x128xbf16, #tpu.memory_space<vmem>>, %arg3: memref<128x128xbf16, #tpu.memory_space<vmem>>, %arg4: memref<1x128xf32, #tpu.memory_space<vmem>>, %arg5: memref<128x128xbf16, #tpu.memory_space<vmem>>, %arg6: memref<1x128xf32, #tpu.memory_space<vmem>>, %arg7: memref<8x128xf32, #tpu.memory_space<vmem>>) attributes {dimension_semantics = [#tpu.dimension_semantics<parallel>, #tpu.dimension_semantics<arbitrary>], iteration_bounds = array<i64: 1, 1>, scalar_prefetch = 0 : i64, scratch_operands = 0 : i64, tpu.core_type = #tpu.core_type<tc>, window_params = [{transform_indices = @transform_0, window_bounds = array<i64: 8, 128>}, {pipeline_mode = #tpu.pipeline_mode<synchronous>, transform_indices = @transform_1, window_bounds = array<i64: 128, 128>}, {pipeline_mode = #tpu.pipeline_mode<synchronous>, transform_indices = @transform_2, window_bounds = array<i64: 1, 128>}, {pipeline_mode = #tpu.pipeline_mode<synchronous>, transform_indices = @transform_3, window_bounds = array<i64: 128, 128>}, {pipeline_mode = #tpu.pipeline_mode<synchronous>, transform_indices = @transform_4, window_bounds = array<i64: 1, 128>}, {transform_indices = @transform_5, window_bounds = array<i64: 8, 128>}]} {
    %c0 = arith.constant 0 : index
    %c0_0 = arith.constant 0 : index
    %0 = vector.load %arg2[%c0, %c0_0] : memref<8x128xbf16, #tpu.memory_space<vmem>>, vector<8x128xbf16>
    %c0_1 = arith.constant 0 : index
    %c0_2 = arith.constant 0 : index
    %1 = vector.load %arg3[%c0_1, %c0_2] : memref<128x128xbf16, #tpu.memory_space<vmem>>, vector<128x128xbf16>
    %cst = arith.constant dense<0.000000e+00> : vector<8x128xf32>
    %2 = tpu.matmul %0, %1, %cst {dimension_numbers = #tpu.dot_dimension_numbers<[1], [0], [0], [1], [0, 0, 1, 1], [], []>} : vector<8x128xbf16>, vector<128x128xbf16>, vector<8x128xf32> -> vector<8x128xf32>
    %c0_3 = arith.constant 0 : index
    %c0_4 = arith.constant 0 : index
    %3 = vector.load %arg4[%c0_3, %c0_4] : memref<1x128xf32, #tpu.memory_space<vmem>>, vector<1x128xf32>
    %4 = vector.broadcast %3 : vector<1x128xf32> to vector<8x128xf32>
    %5 = arith.addf %2, %4 : vector<8x128xf32>
    %cst_5 = arith.constant 0.000000e+00 : f32
    %6 = vector.broadcast %cst_5 : f32 to vector<8x128xf32>
    %7 = arith.maximumf %5, %6 : vector<8x128xf32>
    %8 = arith.truncf %7 : vector<8x128xf32> to vector<8x128xbf16>
    %c0_6 = arith.constant 0 : index
    %c0_7 = arith.constant 0 : index
    %9 = vector.load %arg5[%c0_6, %c0_7] : memref<128x128xbf16, #tpu.memory_space<vmem>>, vector<128x128xbf16>
    %cst_8 = arith.constant dense<0.000000e+00> : vector<8x128xf32>
    %10 = tpu.matmul %8, %9, %cst_8 {dimension_numbers = #tpu.dot_dimension_numbers<[1], [0], [0], [1], [0, 0, 1, 1], [], []>} : vector<8x128xbf16>, vector<128x128xbf16>, vector<8x128xf32> -> vector<8x128xf32>
    %c0_9 = arith.constant 0 : index
    %c0_10 = arith.constant 0 : index
    %11 = vector.load %arg6[%c0_9, %c0_10] : memref<1x128xf32, #tpu.memory_space<vmem>>, vector<1x128xf32>
    %12 = vector.broadcast %11 : vector<1x128xf32> to vector<8x128xf32>
    %13 = arith.addf %10, %12 : vector<8x128xf32>
    %c0_11 = arith.constant 0 : index
    %c0_12 = arith.constant 0 : index
    %14 = vector.load %arg7[%c0_11, %c0_12] : memref<8x128xf32, #tpu.memory_space<vmem>>, vector<8x128xf32>
    tpu.vector_store %arg7[%c0_11, %c0_12], %13 {strides = array<i32>} : memref<8x128xf32, #tpu.memory_space<vmem>>, vector<8x128xf32>,
    return
  }
  func.func @transform_0(%arg0: i32, %arg1: i32) -> (i32, i32) {
    %c0_i32 = arith.constant 0 : i32
    %c0_i32_0 = arith.constant 0 : i32
    return %arg0, %c0_i32 : i32, i32
  }
  func.func @transform_1(%arg0: i32, %arg1: i32) -> (i32, i32) {
    %c0_i32 = arith.constant 0 : i32
    %c0_i32_0 = arith.constant 0 : i32
    return %c0_i32, %arg1 : i32, i32
  }
  func.func @transform_2(%arg0: i32, %arg1: i32) -> (i32, i32) {
    %c0_i32 = arith.constant 0 : i32
    %c0_i32_0 = arith.constant 0 : i32
    return %c0_i32, %arg1 : i32, i32
  }
  func.func @transform_3(%arg0: i32, %arg1: i32) -> (i32, i32) {
    %c0_i32 = arith.constant 0 : i32
    %c0_i32_0 = arith.constant 0 : i32
    return %arg1, %c0_i32 : i32, i32
  }
  func.func @transform_4(%arg0: i32, %arg1: i32) -> (i32, i32) {
    %c0_i32 = arith.constant 0 : i32
    %c0_i32_0 = arith.constant 0 : i32
    %c0_i32_1 = arith.constant 0 : i32
    return %c0_i32, %c0_i32_0 : i32, i32
  }
  func.func @transform_5(%arg0: i32, %arg1: i32) -> (i32, i32) {
    %c0_i32 = arith.constant 0 : i32
    %c0_i32_0 = arith.constant 0 : i32
    return %arg0, %c0_i32 : i32, i32
  }
}

</mosaic_0001>

<bundles_post_ra>
// kernel: feedforward_nn.1
= control target key start
LH: loop header
LB: loop body
LE: loop exit
PB: predicated region body
PF: predicated region fallthrough
CT: control target
= control target key end

     0   :  { %v345_v0 = vmov 0.0   ;;  %vm346_vm0 = vmmov 0   ;;  %s437_s1 = inlined_call_operand.vmem [shape: bf16[128,128], index: 1, kind: input, shape index: {}]   ;;  %s438_s3 = inlined_call_operand.vmem [shape: bf16[128,128], index: 3, kind: input, shape index: {}]   ;;  %s439_s0 = inlined_call_operand.vmem [shape: bf16[8,128], index: 0, kind: input, shape index: {}]   ;;  %s440_s2 = inlined_call_operand.vmem [shape: f32[1,128], index: 2, kind: input, shape index: {}]   ;;  %s441_s4 = inlined_call_operand.vmem [shape: f32[1,128], index: 4, kind: input, shape index: {}]   ;;  %s442_s5 = inlined_call_operand.vmem [shape: f32[8,128], index: 5, kind: output, shape index: {}]  }
   0x1   :  { %287 = vmatprep.subr.bf16.mxu0 %v345_v0  ;;  %v329_v1 = vld [vmem:[%s437_s1] sm:$0xff]   ;;  %303 = vmatprep.mubr.msk.bf16.mxu0 %vm346_vm0, %v345_v0  ;;  %v330_v2 = vld [vmem:[%s437_s1 + $0x8] sm:$0xff]   ;;  %v331_v3 = vld [vmem:[%s437_s1 + $0x10] sm:$0xff]  }
   0x2   :  { %307 = vmatprep.subr.bf16.mxu1 %v345_v0  ;;  %323 = vmatprep.mubr.msk.bf16.mxu1 %vm346_vm0, %v345_v0  ;;  %v337_v4 = vld [vmem:[%s438_s3] sm:$0xff]   ;;  %v332_v5 = vld [vmem:[%s437_s1 + $0x18] sm:$0xff]   ;;  %v338_v6 = vld [vmem:[%s438_s3 + $0x8] sm:$0xff]  }
   0x3   :  { %288 = vmatpush3.bf16.msra.mxu0 %v329_v1  ;;  %308 = vmatpush3.bf16.msra.mxu1 %v337_v4  ;;  %v333_v7 = vld [vmem:[%s437_s1 + $0x20] sm:$0xff]   ;;  %v339_v8 = vld [vmem:[%s438_s3 + $0x10] sm:$0xff]   ;;  %v334_v9 = vld [vmem:[%s437_s1 + $0x28] sm:$0xff]  }
   0x4   :  { %289 = vmatprep.subr.bf16.mxu0 %v345_v0  ;;  %309 = vmatprep.subr.bf16.mxu1 %v345_v0  ;;  %v340_v10 = vld [vmem:[%s438_s3 + $0x18] sm:$0xff]   ;;  %v335_v11 = vld [vmem:[%s437_s1 + $0x30] sm:$0xff]   ;;  %v341_v12 = vld [vmem:[%s438_s3 + $0x20] sm:$0xff]  }
   0x5   :  { %v336_v13 = vld [vmem:[%s437_s1 + $0x38] sm:$0xff]   ;;  %v342_v14 = vld [vmem:[%s438_s3 + $0x28] sm:$0xff]   ;;  %v21_v15 = vld [vmem:[%s439_s0] sm:$0xf] }
   0x6   :  { %v343_v16 = vld [vmem:[%s438_s3 + $0x30] sm:$0xff]   ;;  %v344_v17 = vld [vmem:[%s438_s3 + $0x38] sm:$0xff]   ;;  %v251_v18 = vld [vmem:[%s440_s2] ss:$0 sm:$0xff] }
   0x7   :  { %290 = vmatpush3.bf16.msra.mxu0 %v330_v2  ;;  %310 = vmatpush3.bf16.msra.mxu1 %v338_v6  ;;  %v260_v26 = vld [vmem:[%s441_s4] ss:$0 sm:$0xff] }
   0x8   :  { %291 = vmatprep.subr.bf16.mxu0 %v345_v0  ;;  %311 = vmatprep.subr.bf16.mxu1 %v345_v0 }
   0xb   :  { %292 = vmatpush3.bf16.msra.mxu0 %v331_v3  ;;  %312 = vmatpush3.bf16.msra.mxu1 %v339_v8 }
   0xc   :  { %293 = vmatprep.subr.bf16.mxu0 %v345_v0  ;;  %313 = vmatprep.subr.bf16.mxu1 %v345_v0 }
   0xf   :  { %294 = vmatpush3.bf16.msra.mxu0 %v332_v5  ;;  %314 = vmatpush3.bf16.msra.mxu1 %v340_v10 }
  0x10   :  { %295 = vmatprep.subr.bf16.mxu0 %v345_v0  ;;  %315 = vmatprep.subr.bf16.mxu1 %v345_v0 }
  0x13   :  { %296 = vmatpush3.bf16.msra.mxu0 %v333_v7  ;;  %316 = vmatpush3.bf16.msra.mxu1 %v341_v12 }
  0x14   :  { %297 = vmatprep.subr.bf16.mxu0 %v345_v0  ;;  %317 = vmatprep.subr.bf16.mxu1 %v345_v0 }
  0x17   :  { %298 = vmatpush3.bf16.msra.mxu0 %v334_v9  ;;  %318 = vmatpush3.bf16.msra.mxu1 %v342_v14 }
  0x18   :  { %299 = vmatprep.subr.bf16.mxu0 %v345_v0  ;;  %319 = vmatprep.subr.bf16.mxu1 %v345_v0 }
  0x1b   :  { %300 = vmatpush3.bf16.msra.mxu0 %v335_v11  ;;  %320 = vmatpush3.bf16.msra.mxu1 %v343_v16 }
  0x1c   :  { %301 = vmatprep.subr.bf16.mxu0 %v345_v0  ;;  %321 = vmatprep.subr.bf16.mxu1 %v345_v0 }
  0x1f   :  { %302 = vmatpush3.bf16.msra.mxu0 %v336_v13  ;;  %322 = vmatpush3.bf16.msra.mxu1 %v344_v17 }
  0x22   :  { %304 = vmatmul.mubr.bf16.vlgmr.msra.gmra.mrb[0].mxu0 %v21_v15 }
  0xf5   :  { %v127_v19 = vpop.f32.mrb[0].mxu0 }
  0xf6   :  { %v128_v20 = vadd.f32 %v251_v18, %v127_v19  ;;  %v305_v21 = vpop.f32.mrb[1].mxu0 }
  0xf7   :  { %v130_v22 = vpop.f32.mrb[2].mxu0 }
  0xf8   :  { %v133_v23 = vmax.f32 %v128_v20, 0.0  ;;  %v306_v24 = vpop.f32.mrb[3].mxu0 }
  0xfa   :  { %v134_v25 = vpack.c.bf16 %v133_v23, %v133_v23 }
  0xfc   :  { %324 = vmatmul.mubr.bf16.vlgmr.msra.gmra.mrb[0].mxu1 %v134_v25 }
 0x1cf   :  { %v240_v27 = vpop.f32.mrb[0].mxu1 }
 0x1d0   :  { %v241_v28 = vadd.f32 %v260_v26, %v240_v27  ;;  %v325_v29 = vpop.f32.mrb[1].mxu1 }
 0x1d1   :  { %v243_v30 = vpop.f32.mrb[2].mxu1 }
 0x1d2   :  { %246 = vst [vmem:[%s442_s5] sm:$0xff] %v241_v28  ;;  %v326_v31 = vpop.f32.mrb[3].mxu1 }

</bundles_post_ra>
